<compile_context>
chip_gen: v7x
topology: tpu7x:2x2x1
jax: 0.10.0
libtpu: 0.0.40
codegen_flags: <defaults>
</compile_context>

<pallas_src>
import math

import jax
import jax.numpy as jnp
from jax.experimental import pallas as pl
from jax.experimental.pallas import tpu as pltpu


def _round_up(x: int, m: int) -> int:
    return (x + m - 1) // m * m


def _pe_kernel(coef_ref, o_ref):
    """One (tile_rows, W) tile of the packed PE slab.

    coef_ref: (2, W) f32
       coef[0, c] = k * div_term(dim(c))                       (per-slab-row slope)
       coef[1, c] = off(c) * div_term(dim(c)) + phase(dim(c))  (per-lane intercept)
    angle(R, c) = R * coef[0, c] + coef[1, c]  ==  pos * div_term (+ pi/2 for odd dims)
    """
    rows, w = o_ref.shape
    # Per-tile setup (done once per grid step): fold the global tile offset r0
    # into the intercept so the inner expression is a single fma + sin.
    r0 = (pl.program_id(0) * rows).astype(jnp.float32)
    slope = coef_ref[0:1, :]                      # (1, W), VMEM-resident
    icept = coef_ref[1:2, :] + slope * r0         # (1, W), per-tile
    # Sublane (slab-row-within-tile) index; one int->f32 convert per vreg.
    r = jax.lax.broadcasted_iota(jnp.int32, (rows, w), 0).astype(jnp.float32)
    # One transcendental per element: sin for even dims, sin(x + pi/2) == cos for odd.
    o_ref[...] = jnp.sin(r * slope + icept).astype(o_ref.dtype)


def make_pe_table(d_model: int, max_len: int,
                  target_tile_bytes: int = 8 * 1024 * 1024) -> jnp.ndarray:
    """Build the full (max_len, d_model) float32 PE table with a Pallas kernel."""
    # Lane-dense slab width: smallest multiple of both d_model and 128.
    w = d_model * 128 // math.gcd(d_model, 128)
    k = w // d_model                              # positions packed per slab row
    num_rows = -(-max_len // k)                   # cdiv(max_len, k)
    num_rows_8 = _round_up(num_rows, 8)           # pad only to 8 sublanes

    # ---- tile sizing: by bytes, balanced across grid steps -------------------
    bytes_per_row = w * 4
    cap_rows = max(8, (target_tile_bytes // bytes_per_row) // 8 * 8)
    # >= 2 grid steps when there is enough work, so v7x can use both TCs.
    min_steps = 2 if num_rows_8 >= 16 else 1
    num_steps = max(min_steps, pl.cdiv(num_rows_8, cap_rows))
    tile_rows = max(8, _round_up(-(-num_rows_8 // num_steps), 8))
    grid = pl.cdiv(num_rows_8, tile_rows)         # ragged tail handled by Pallas

    # ---- host-side (init-time) per-lane coefficients -------------------------
    lane = jnp.arange(w, dtype=jnp.int32)
    dim = lane % d_model                                   # model-dim index of this lane
    off = (lane // d_model).astype(jnp.float32)            # position offset within slab row
    two_i = (2 * (dim // 2)).astype(jnp.float32)
    div_term = jnp.exp(two_i * (-(math.log(10000.0) / d_model)))
    phase = jnp.where(dim % 2 == 0, 0.0, math.pi / 2).astype(jnp.float32)
    coef = jnp.stack([k * div_term, off * div_term + phase]).astype(jnp.float32)  # (2, W)

    slab = pl.pallas_call(
        _pe_kernel,
        out_shape=jax.ShapeDtypeStruct((num_rows_8, w), jnp.float32),
        grid=(grid,),
        in_specs=[pl.BlockSpec((2, w), lambda i: (0, 0))],
        out_specs=pl.BlockSpec((tile_rows, w), lambda i: (i, 0)),
        compiler_params=pltpu.CompilerParams(
            dimension_semantics=("parallel",),
            vmem_limit_bytes=32 * 1024 * 1024,
        ),
    )(coef)

    # Unpack the lane-dense slab back to (max_len, d_model); at most 7 slab rows
    # (< 8*k positions) of padding are dropped here.
    return slab.reshape(num_rows_8 * k, d_model)[:max_len]


class PositionalEncoding:
    """JAX/Pallas port of the PyTorch PositionalEncoding module."""

    def __init__(self, d_model: int, max_len: int = 5000):
        self.d_model = d_model
        self.max_len = max_len
        # Buffer computed once at init, exactly like register_buffer('pe', ...).
        self.pe = make_pe_table(d_model, max_len)[None, :, :]  # (1, max_len, d_model)

    def __call__(self, x: jnp.ndarray) -> jnp.ndarray:
        """x: (N, T, D) -> returns (1, T, d_model)."""
        length = x.shape[1]
        return self.pe[:, :length]


def _reference_pe(d_model: int, max_len: int) -> jnp.ndarray:
    """Plain-JAX reference (mirrors the PyTorch buffer construction)."""
    pos = jnp.arange(max_len, dtype=jnp.float32)[:, None]
    div = jnp.exp(jnp.arange(0, d_model, 2, dtype=jnp.float32)
                  * -(math.log(10000.0) / d_model))
    pe = jnp.zeros((max_len, d_model), jnp.float32)
    pe = pe.at[:, 0::2].set(jnp.sin(pos * div))
    pe = pe.at[:, 1::2].set(jnp.cos(pos * div))
    return pe[None]


if __name__ == "__main__":
    d_model = 32
    max_len = 64       # small, stands in for the default 5000
    N, T = 2, 8

    key = jax.random.PRNGKey(0)
    x = jax.random.normal(key, (N, T, d_model), dtype=jnp.float32)

    module = PositionalEncoding(d_model, max_len=max_len)
    out = module(x)
    out = jax.block_until_ready(out)

    assert out.shape == (1, T, d_model), out.shape
    ref = _reference_pe(d_model, max_len)[:, :T]
    # atol 1e-4: the phase-folded sin (cos(x) == sin(x + pi/2)) and the
    # reassociated angle differ from the reference by a few float32 ulps.
    # TODO(synk): if tighter accuracy at very large max_len is needed, use a
    # separate cos path instead of folding pi/2 into the argument.
    assert jnp.allclose(out, ref, atol=1e-4, rtol=0.0), "mismatch vs reference"

    # Also sanity-check a table whose size is NOT a multiple of the tile
    # (ragged tail, d_model not a divisor of 128).
    full = make_pe_table(48, 1000)
    full = jax.block_until_ready(full)
    full_ref = _reference_pe(48, 1000)[0]
    assert full.shape == (1000, 48), full.shape
    assert jnp.allclose(full, full_ref, atol=1e-3, rtol=0.0), "mismatch vs reference (ragged)"

    print("KERNEL_OK")
</pallas_src>

<mosaic_0001>
module attributes {stable_mosaic.version = 11 : i64} {
  func.func @_pe_kernel(%arg0: i32, %arg1: memref<2x128xf32, #tpu.memory_space<vmem>>, %arg2: memref<8x128xf32, #tpu.memory_space<vmem>>) attributes {dimension_semantics = [#tpu.dimension_semantics<parallel>], iteration_bounds = array<i64: 2>, scalar_prefetch = 0 : i64, scratch_operands = 0 : i64, tpu.core_type = #tpu.core_type<tc>, window_params = [{pipeline_mode = #tpu.pipeline_mode<synchronous>, transform_indices = @transform_0, window_bounds = array<i64: 2, 128>}, {transform_indices = @transform_1, window_bounds = array<i64: 8, 128>}]} {
    %c8_i32 = arith.constant 8 : i32
    %0 = arith.muli %arg0, %c8_i32 : i32
    %1 = arith.sitofp %0 : i32 to f32
    %c0 = arith.constant 0 : index
    %c0_0 = arith.constant 0 : index
    %2 = vector.load %arg1[%c0, %c0_0] : memref<2x128xf32, #tpu.memory_space<vmem>>, vector<1x128xf32>
    %c1 = arith.constant 1 : index
    %c0_1 = arith.constant 0 : index
    %3 = vector.load %arg1[%c1, %c0_1] : memref<2x128xf32, #tpu.memory_space<vmem>>, vector<1x128xf32>
    %4 = vector.broadcast %1 : f32 to vector<1x128xf32>
    %5 = arith.mulf %2, %4 : vector<1x128xf32>
    %6 = arith.addf %3, %5 : vector<1x128xf32>
    %7 = tpu.iota {dimensions = array<i32: 0>} : vector<8x128xi32>
    %8 = arith.sitofp %7 : vector<8x128xi32> to vector<8x128xf32>
    %9 = vector.broadcast %2 : vector<1x128xf32> to vector<8x128xf32>
    %10 = arith.mulf %8, %9 : vector<8x128xf32>
    %11 = vector.broadcast %6 : vector<1x128xf32> to vector<8x128xf32>
    %12 = arith.addf %10, %11 : vector<8x128xf32>
    %13 = math.sin %12 : vector<8x128xf32>
    %c0_2 = arith.constant 0 : index
    %c0_3 = arith.constant 0 : index
    %14 = vector.load %arg2[%c0_2, %c0_3] : memref<8x128xf32, #tpu.memory_space<vmem>>, vector<8x128xf32>
    tpu.vector_store %arg2[%c0_2, %c0_3], %13 {strides = array<i32>} : memref<8x128xf32, #tpu.memory_space<vmem>>, vector<8x128xf32>,
    return
  }
  func.func @transform_0(%arg0: i32) -> (i32, i32) {
    %c0_i32 = arith.constant 0 : i32
    %c0_i32_0 = arith.constant 0 : i32
    %c0_i32_1 = arith.constant 0 : i32
    return %c0_i32, %c0_i32_0 : i32, i32
  }
  func.func @transform_1(%arg0: i32) -> (i32, i32) {
    %c0_i32 = arith.constant 0 : i32
    %c0_i32_0 = arith.constant 0 : i32
    return %arg0, %c0_i32 : i32, i32
  }
}

</mosaic_0001>

<bundles_post_ra>
// kernel: tpu_custom_call.1
= control target key start
LH: loop header
LB: loop body
LE: loop exit
PB: predicated region body
PF: predicated region fallthrough
CT: control target
= control target key end

     0   :  { %6 = vsyncpa [#allocation3], 0  ;;  %s651_s0 = inlined_call_operand.hbm [shape: f32[2,128], index: 0, kind: input, shape index: {}]   ;;  %s652_s1 = inlined_call_operand.hbm [shape: f32[16,128], index: 1, kind: output, shape index: {}]  }
   0x1   :  { %7 = vsyncpa [#allocation4], 0 }
   0x2   :  { %9 = vsyncpa [#allocation4 + $0x1], 0  ;;  %s499_s6 = smov 0   ;;  %s501_s7 = smov 0  }
   0x3   :  { %s503_s8 = smov 0   ;;  %s505_s9 = smov 0  }
   0x4 LB: > { %s520_s10 = sadd.s32 4294967295, %s479_s9   ;;  %s306_s11 = sadd.s32 4294967294, %s479_s9   ;;  %s479_s9 = sphi %s505_s9, %s668_s9   ;;  %s475_s8 = sphi %s503_s8, %s667_s8   ;;  %s471_s7 = sphi %s501_s7, %s666_s7   ;;  %s467_s6 = sphi %s499_s6, %s665_s6  }
   0x5   : > { %s524_s12 = sadd.s32 1, %s479_s9   ;;  %s43_s13 = sadd.s32 1, %s475_s8 }
   0x6   : > { %s40_s14 = ssub.s32 %s479_s9, %s524_s12  ;;  %p53_p0 = scmp.ne.s32.totalorder %s475_s8, %s471_s7 }
   0x7   : > { %p41_p1 = scmp.eq.s32.totalorder %s40_s14, 0  ;;  %p54_p2 = scmp.eq.s32.totalorder %s520_s10, 1 }
   0x8   : > { %p59_p3 = scmp.ne.s32.totalorder %s471_s7, %s467_s6  ;;  %p60_p4 = scmp.eq.s32.totalorder %s306_s11, 1 }
   0x9   : > { %s535_s15 = scalar_select %p41_p1, %s475_s8, %s43_s13  }
   0xa   : > { %p537_p5 = por %p54_p2, %p53_p0  ;;  %p541_p6 = por %p60_p4, %p59_p3 }
   0xb   : > { %p307_p7 = scmp.ge.s32.totalorder %s479_s9, 1  ;;  %p67_p8 = scmp.lt.s32.totalorder %s479_s9, 3 }
   0xc   : > { %s656_s16 = scalar_select %p537_p5, 1, 0 }
   0xd   : > { %s657_s17 = scalar_select %p541_p6, 1, 0 }
   0xe   : > { %p653_p9 = scmp.eq.s32.totalorder %s520_s10, 0  ;;  %p548_p10 = pnand %p307_p7, %p67_p8 }
   0xf   : > { %s481_s19 = smov [#allocation2]   ;;  %s385_s24 = scalar_lea.hbm %s651_s0, 32 }
  0x10   : > { %s658_s18 = scalar_select %p548_p10, 1, 0 }
  0x11   : > { %s80_s20 = sshll.u32 %s481_s19, 4  ;;  %p331_p11 = pneg %p548_p10  ;;  %s81_s20 = int_to_ptr.vmem [resolvable:$true] %s80_s20 }
  0x12   : > { %p386_p13 = scmp.ne.s32.totalorder %s651_s0, %s385_s24  ;;  %p392_p3 = scmp.lt.u32.totalorder %s385_s24, %s651_s0 }
  0x13   : > { %p556_p12 = pnand %p653_p9, %p331_p11 }
  0x15   : > { %p387_p0 = pneg %p556_p12 }
  0x17   : > { %p388_p1 = pnand %p387_p0, %p386_p13 }
  0x19   : > { %p389_p2 = pneg %p388_p1 }
  0x1b   : > { %p394_p4 = pnand %p392_p3, %p389_p2 }
  0x1d   : > { %397 = shalt.err (!%p394_p4)
}
  0x1e   : > { %s398_s29 = scalar_lea.vmem %s81_s20, 32  ;;  %p406_p9 = scmp.lt.s32.totalorder %s81_s20, %s81_s20 }
  0x1f   : > { %p399_p7 = scmp.ne.s32.totalorder %s81_s20, %s398_s29  ;;  %p407_p6 = scmp.lt.s32.totalorder %s398_s29, %s398_s29 }
  0x21   : > { %p401_p8 = pnand %p399_p7, %p387_p0  ;;  %p408_p5 = por %p407_p6, %p406_p9 }
  0x23   : > { %p402_p11 = pneg %p401_p8 }
  0x25   : > { %p409_p10 = pnand %p408_p5, %p402_p11 }
  0x27   : > { %412 = shalt.err (!%p409_p10)
}
  0x28   : > { %334 = dma.hbm_to_vmem [thread:$0]  (!%p556_p12), %s651_s0, 32, %s81_s20, [#allocation3]  }
  0x29   : > { %p660_p13 = scmp.ne.s32.totalorder %s658_s18, 0 }
  0x2a   : > { %p661_p1 = scmp.eq.s32.totalorder (!%p660_p13), %s520_s10, 0 }
  0x2b   : > { %93 = sbr.rel (%p660_p13) target bundleno = 157 (0x9d), region = 24 }
  0x32   : > { %458 = dma.done.wait (%p661_p1), [#allocation3], 32   ;;  %p662_p0 = pmov %p661_p1 }
  0x33   : > { %s312_s3 = sshll.u32 %s520_s10, 3  ;;  %v115_v0 = vlaneseq  ;;  %v110_v5 = vld [vmem:[#allocation2] sm:$0x1]  ;;  %v111_v6 = vld [vmem:[#allocation2 + $0x1] sm:$0x1]  ;;  %s105_s5 = sand.u32 1, %s471_s7  }
  0x34   : > { %460 = vsyncadd (%p662_p0), [#allocation3], 4294967264  ;;  %s109_s4 = scvt.s32.f32 %s312_s3  ;;  %v482_v24 = vmov 683565275   ;;  %v483_v26 = vmov 2475754826  }
  0x35   : > { %v116_v1 = vshrl.u32 %v115_v0, 7  ;;  %v484_v28 = vmov 2131351028   ;;  %v485_v30 = vmov 2102212464   ;;  %s311_s11 = sshll.u32 %s105_s5, 3 }
  0x36   : > { %v112_v3 = vstv %s109_s4  ;;  %v486_v32 = vmov 920167782   ;;  %v487_v39 = vmov 1326507024   ;;  %s107_s13 = scalar_lea.vmem [#allocation5], %s311_s11  ;;  %s318_s18 = sshll.u32 %s520_s10, 7 }
  0x37   : > { %v120_v2 = vsub.s32 0, %v116_v1  ;;  %v117_v4 = vcvt.s32.f32 %v116_v1  ;;  %v113_v7 = vmul.f32 %v112_v3, %v110_v5  ;;  %s247_s14 = sshll.u32 %s107_s13, 4  ;;  %s611_s21 = scalar_lea.hbm %s652_s1, %s318_s18  ;;  %s606_s14 = int_to_ptr.vmem [resolvable:$true] %s247_s14 }
  0x38   : > { %s234_s22 = scalar_lea.sflag [#allocation4], %s105_s5  ;;  %s413_s23 = scalar_lea.vmem %s606_s14, 128 }
  0x39   : > { %v121_v8 = vrot.slane %v110_v5, %v120_v2  ;;  %v114_v9 = vadd.f32 %v113_v7, %v111_v6  ;;  %p414_p5 = scmp.ne.s32.totalorder %s606_s14, %s413_s23  ;;  %p663_p6 = scmp.ne.s32.totalorder %s656_s16, 0 }
  0x3a   : > { %s488_s10 = smov [#allocation5]  }
  0x3b   : > { %v122_v10 = vmul.f32 %v121_v8, %v117_v4  ;;  %v126_v11 = vrot.slane %v114_v9, %v120_v2  ;;  %p415_p9 = pnand %p414_p5, %p663_p6  ;;  %s417_s24 = sshll.u32 %s488_s10, 4  ;;  %s418_s24 = int_to_ptr.vmem [resolvable:$false] %s417_s24 }
  0x3c   : > { %s419_s25 = scalar_lea.vmem %s418_s24, 256  ;;  %p420_p12 = scmp.lt.s32.totalorder %s606_s14, %s418_s24 }
  0x3d   : > { %v583_v12 = vadd.f32 %v126_v11, %v122_v10  ;;  %p416_p10 = pneg %p415_p9  ;;  %p421_p2 = scmp.lt.s32.totalorder %s419_s25, %s413_s23 }
  0x3f   : > { %v131_v13 = vand.u32 2139095040, %v583_v12  ;;  %v128_v15 = vand.u32 2147483647, %v583_v12  ;;  %vm130_vm7 = vcmp.lt.s32.totalorder %v583_v12, 0  ;;  %vm220_vm12 = vweird.f32 %v583_v12  ;;  %p422_p3 = por %p421_p2, %p420_p12 }
  0x41   : > { %v132_v14 = vshrl.u32 %v131_v13, 23  ;;  %v135_v18 = vand.u32 8388607, %v128_v15  ;;  %vm129_vm8 = vcmp.le.f32.partialorder %v128_v15, 0.7853982  ;;  %p423_p4 = pnand %p422_p3, %p416_p10 }
  0x43   : > { %v313_v16 = vadd.s32 4294967169, %v132_v14  ;;  %v136_v21 = vor.u32 8388608, %v135_v18 }
  0x45   : > { %v138_v17 = vadd.s32 1, %v313_v16  ;;  %v176_v41 = vshll.u32 %v136_v21, 8 }
  0x47   : > { %vm139_vm0 = vcmp.gt.s32.totalorder %v138_v17, 0 }
  0x48   : > { %v140_v19 = vsel %vm139_vm0, %v138_v17, 0 }
  0x49   : > { %v142_v20 = vand.u32 31, %v140_v19  ;;  %v141_v22 = vshrl.u32 %v140_v19, 5 }
  0x4b   : > { %v143_v23 = vsub.s32 32, %v142_v20  ;;  %v145_v25 = vshll.u32 %v482_v24, %v142_v20  ;;  %v148_v27 = vshll.u32 %v483_v26, %v142_v20  ;;  %v151_v29 = vshll.u32 %v484_v28, %v142_v20 }
  0x4c   : > { %v154_v31 = vshll.u32 %v485_v30, %v142_v20  ;;  %v157_v33 = vshll.u32 %v486_v32, %v142_v20  ;;  %vm160_vm1 = vcmp.lt.s32.totalorder %v141_v22, 1  ;;  %vm163_vm2 = vcmp.lt.s32.totalorder %v141_v22, 4 }
  0x4d   : > { %v144_v34 = vshrl.u32 %v482_v24, %v143_v23  ;;  %v146_v35 = vshrl.u32 %v483_v26, %v143_v23  ;;  %v149_v36 = vshrl.u32 %v484_v28, %v143_v23  ;;  %v152_v37 = vshrl.u32 %v485_v30, %v143_v23 }
  0x4e   : > { %v155_v38 = vshrl.u32 %v486_v32, %v143_v23  ;;  %v158_v40 = vshrl.u32 %v487_v39, %v143_v23  ;;  %vm161_vm3 = vcmp.lt.s32.totalorder %v141_v22, 2  ;;  %vm162_vm4 = vcmp.lt.s32.totalorder %v141_v22, 3 }
  0x4f   : > { %v147_v42 = vor.u32 %v146_v35, %v145_v25  ;;  %v150_v43 = vor.u32 %v149_v36, %v148_v27  ;;  %v153_v44 = vor.u32 %v152_v37, %v151_v29 }
  0x50   : > { %v156_v45 = vor.u32 %v155_v38, %v154_v31  ;;  %v159_v46 = vor.u32 %v158_v40, %v157_v33 }
  0x51   : > { %v164_v47 = vsel %vm160_vm1, %v144_v34, %v147_v42  ;;  %v165_v48 = vsel %vm163_vm2, %v153_v44, 2102212464  ;;  %v168_v49 = vsel %vm160_vm1, %v147_v42, %v150_v43  ;;  %v172_v50 = vsel %vm160_vm1, %v150_v43, %v153_v44 }
  0x52   : > { %v166_v51 = vsel %vm162_vm4, %v150_v43, %v165_v48  ;;  %v169_v52 = vsel %vm163_vm2, %v156_v45, 920167782  ;;  %v173_v53 = vsel %vm163_vm2, %v159_v46, 1326507024 }
  0x53   : > { %v170_v54 = vsel %vm162_vm4, %v153_v44, %v169_v52  ;;  %v174_v55 = vsel %vm162_vm4, %v156_v45, %v173_v53  ;;  %v167_v56 = vsel %vm161_vm3, %v164_v47, %v166_v51 }
  0x54   : > { %v171_v57 = vsel %vm161_vm3, %v168_v49, %v170_v54  ;;  %v175_v58 = vsel %vm161_vm3, %v172_v50, %v174_v55  ;;  %v183_v63 = vmul.u32 %v176_v41, %v167_v56 }
  0x55   : > { %v589_v59 = vmul.u32.u64.low %v176_v41, %v175_v58  ;;  %v590_v60 = vmul.u32.u64.high %v176_v41, %v175_v58, %v589_v59  ;;  %v592_v61 = vmul.u32.u64.low %v176_v41, %v171_v57  ;;  %v593_v62 = vmul.u32.u64.high %v176_v41, %v171_v57, %v592_v61 }
  0x57   : > { %vm185_vm5 = vc.u32 %v590_v60, %v592_v61  ;;  %v186_v0 = vadd.s32 1, %v593_v62  ;;  %v184_v11 = vadd.s32 %v592_v61, %v590_v60 }
  0x59   : > { %v187_v1 = vsel %vm185_vm5, %v186_v0, %v593_v62 }
  0x5a   : > { %v188_v2 = vadd.s32 %v187_v1, %v183_v63 }
  0x5c   : > { %v189_v3 = vadd.s32 536870912, %v188_v2 }
  0x5e   : > { %v190_v4 = vshrl.u32 %v189_v3, 30 }
  0x60   : > { %v191_v5 = vshll.u32 %v190_v4, 30  ;;  %v214_v25 = vsub.s32 4, %v190_v4 }
  0x62   : > { %v192_v6 = vsub.s32 %v188_v2, %v191_v5  ;;  %v215_v28 = vsel %vm130_vm7, %v214_v25, %v190_v4 }
  0x63   : > { %v217_v31 = vsel %vm129_vm8, 0, %v215_v28 }
  0x64   : > { %v194_v7 = vsub.s32 0, %v192_v6  ;;  %v221_v32 = vadd.s32 3, %v217_v31 }
  0x66   : > { %v314_v8 = vmin.u32 %v194_v7, %v192_v6  ;;  %v222_v33 = vand.u32 3, %v221_v32 }
  0x68   : > { %v196_v9 = vclz %v314_v8  ;;  %vm227_vm9 = vcmp.eq.s32.totalorder %v222_v33, 2  ;;  %vm224_vm10 = vcmp.eq.s32.totalorder %v222_v33, 0  ;;  %vm223_vm11 = vcmp.lt.s32.totalorder %v222_v33, 2 }
  0x6a   : > { %v315_v10 = vadd.s32 4294967294, %v196_v9 }
  0x6c   : > { %vm316_vm6 = vcmp.lt.s32.totalorder %v315_v10, 0 }
  0x6d   : > { %v199_v13 = vsel %vm316_vm6, 0, %v315_v10 }
  0x6e   : > { %v200_v14 = vsub.s32 32, %v199_v13  ;;  %v201_v16 = vshll.u32 %v192_v6, %v199_v13  ;;  %v204_v17 = vsub.s32 4294967266, %v199_v13 }
  0x70   : > { %v202_v18 = vshrl.u32 %v184_v11, %v200_v14  ;;  %v205_v19 = vadd.s32 127, %v204_v17 }
  0x72   : > { %v203_v20 = vor.u32 %v202_v18, %v201_v16  ;;  %v206_v21 = vshll.u32 %v205_v19, 23 }
  0x74   : > { %v207_v22 = vor.u32 4788187, %v206_v21  ;;  %v210_v23 = vcvt.s32.f32 %v203_v20 }
  0x76   : > { %v208_v24 = vand.u32 2147483647, %v207_v22 }
  0x78   : > { %v211_v26 = vmul.f32 %v210_v23, %v208_v24 }
  0x7a   : > { %v212_v27 = vxor.u32 2147483648, %v211_v26 }
  0x7c   : > { %v213_v29 = vsel %vm130_vm7, %v212_v27, %v211_v26 }
  0x7d   : > { %v216_v30 = vsel %vm129_vm8, %v583_v12, %v213_v29 }
  0x7e   : > { %381 = vcosq.f32 %v216_v30 }
  0x7f   : > { %383 = vsinq.f32 %v216_v30 }
  0x88   : > { %v382_v34 = vpop.eup %381 }
  0x89   : > { %v384_v35 = vpop.eup %383  ;;  %v228_v36 = vxor.u32 2147483648, %v382_v34 }
  0x8a   : > { %v225_v15 = vxor.u32 2147483648, %v384_v35 }
  0x8b   : > { %v229_v37 = vsel %vm227_vm9, %v228_v36, %v384_v35 }
  0x8c   : > { %v226_v38 = vsel %vm224_vm10, %v382_v34, %v225_v15 }
  0x8d   : > { %v230_v39 = vsel %vm223_vm11, %v226_v38, %v229_v37 }
  0x8e   : > { %v231_v40 = vsel %vm220_vm12, nan, %v230_v39 }
  0x8f   : > { %232 = vst [vmem:[%s107_s13] sm:$0xff] %v231_v40 }
  0x90   : > { %426 = shalt.err (!%p423_p4)
}
  0x91   : > { %s427_s26 = scalar_lea.hbm %s611_s21, 128  ;;  %s431_s29 = scalar_lea.hbm %s652_s1, 256 }
  0x92   : > { %p428_p7 = scmp.ne.s32.totalorder %s611_s21, %s427_s26  ;;  %p432_p13 = scmp.lt.u32.totalorder %s611_s21, %s652_s1 }
  0x93   : > { %p433_p1 = scmp.lt.u32.totalorder %s431_s29, %s427_s26  ;;  %p435_p5 = scmp.lt.u32.totalorder %s427_s26, %s611_s21 }
  0x94   : > { %p429_p8 = pnand %p428_p7, %p663_p6 }
  0x95   : > { %p434_p0 = por %p433_p1, %p432_p13 }
  0x96   : > { %p430_p11 = pneg %p429_p8 }
  0x97   : > { %p436_p9 = por %p435_p5, %p434_p0 }
  0x99   : > { %p437_p10 = pnand %p436_p9, %p430_p11 }
  0x9b   : > { %440 = shalt.err (!%p437_p10)
}
  0x9c   : > { %329 = dma.vmem_to_hbm [thread:$0]  (%p663_p6), %s606_s14, 128, %s611_s21, %s234_s22  }
  0x9d PF: > { %p341_p12 = scmp.ge.s32.totalorder %s479_s9, 2  ;;  %s259_s3 = sand.u32 1, %s467_s6  }
  0x9e   : > { %p664_p2 = scmp.ne.s32.totalorder %s657_s17, 0  ;;  %s260_s4 = scalar_lea.sflag [#allocation4], %s259_s3 }
  0xa0   : > { %p336_p3 = pnand %p341_p12, %p664_p2 }
  0xa2   : > { %462 = dma.done.wait (!%p336_p3), %s260_s4, 128  }
  0xa3   : > { %464 = vsyncadd (!%p336_p3), %s260_s4, 4294967168  ;;  %p12_p4 = scmp.ge.s32.totalorder %s524_s12, 4   ;;  %s665_s6 = smov %s471_s7 }
  0xa4   : > { %s666_s7 = smov %s475_s8  ;;  %s667_s8 = smov %s535_s15 }
  0xa5   : > { %s668_s9 = smov %s524_s12  ;;  %14 = sbr.rel (!%p12_p4) target bundleno = 4 (0x4), region = 61 }
  0xac   :  { %265 = vsyncpa [#allocation3], 1 }
  0xad   :  { %267 = vsyncpa [#allocation3 + $0x1], 1 }
  0xae   :  { %268 = vsyncpa [#allocation4], 1 }
  0xaf   :  { %270 = vsyncpa [#allocation4 + $0x1], 1 }

</bundles_post_ra>
